<compile_context>
chip_gen: v5e
topology: v5e:2x2
jax: 0.10.0
libtpu: 0.0.40
codegen_flags: <defaults>
</compile_context>

<pallas_src>
import jax
import jax.numpy as jnp
from jax import lax
from jax.scipy.special import erf as jsp_erf
from jax.experimental import pallas as pl
from jax.experimental.pallas import tpu as pltpu

_INV_SQRT2 = 0.7071067811865476


def _erf_approx(x):
    # Abramowitz & Stegun 7.1.26 rational approximation, |err| <= 1.5e-7
    # (~f32 eps). Used in-kernel because Mosaic has no native erf lowering
    # guarantee; the exp() rides the EUP slot (free on the VALU).
    p = 0.3275911
    a1, a2, a3, a4, a5 = (0.254829592, -0.284496736, 1.421413741,
                          -1.453152027, 1.061405429)
    s = jnp.where(x >= 0.0, 1.0, -1.0)
    ax = jnp.abs(x)
    t = 1.0 / (1.0 + p * ax)
    poly = ((((a5 * t + a4) * t + a3) * t + a2) * t + a1) * t
    return s * (1.0 - poly * jnp.exp(-ax * ax))


def _gelu_erf(v):
    return (v * 0.5) * (_erf_approx(v * _INV_SQRT2) + 1.0)


# ----------------------------------------------------------------------------
# Single fused kernel: stride-2 conv (9 phase-selected MACs) + conv-transpose
# scalar-FMA identity + erf-GELU + erf-GELU + add. One grid step = one image.
# ----------------------------------------------------------------------------
def _fused_fwd_kernel(ph_ref, w_ref, s_ref, o_ref):
    """
    ph_ref : (4, 1, ho+1, wo+1) VMEM  polyphase planes of the zero-padded input;
             plane p = 2*a + b holds xpad[2r + a, 2c + b]
    w_ref  : (9,) SMEM   conv weight, row-major 3x3
    s_ref  : (3,) SMEM   [conv_bias, convT_center_weight, convT_bias]
    o_ref  : (1, ho, wo) VMEM
    """
    _, ho, wo = o_ref.shape

    # Load the four phase planes once; taps are plain (offset 0/1) slices.
    planes = [ph_ref[p] for p in range(4)]          # each (1, ho+1, wo+1)

    # stride-2 'same' 3x3 conv == 9 phase-selected MACs (no padding, no
    # subsampling, no wasted positions).
    acc = jnp.full((1, ho, wo), s_ref[0], dtype=jnp.float32)
    for di in range(3):
        for dj in range(3):
            plane = planes[2 * (di % 2) + (dj % 2)]
            oi, oj = di // 2, dj // 2
            acc = acc + plane[:, oi:oi + ho, oj:oj + wo] * w_ref[3 * di + dj]
    v1 = acc

    # ConvTranspose2d(k=3, stride=2, pad=1) restricted to the stride-2-aligned
    # output positions reduces exactly to a scalar FMA on v1: every other tap
    # of the dilated conv lands on an injected zero.
    v2 = v1 * s_ref[1] + s_ref[2]

    # fused erf-GELU(v2_aligned) + erf-GELU(v1)
    o_ref[...] = _gelu_erf(v2) + _gelu_erf(v1)


# ----------------------------------------------------------------------------
# Model forward
# ----------------------------------------------------------------------------
@jax.jit
def model_forward(x, conv_w, conv_b, convt_w, convt_b):
    # x: (N, 1, H, W) float32 NCHW, H and W even (W on lanes, H on sublanes).
    n, c, h, w = x.shape
    ho, wo = h // 2, w // 2
    hp, wp = ho + 1, wo + 1

    # Single small XLA prep: pad-by-1 halo + polyphase split (reshape/transpose).
    xpad = jnp.pad(x[:, 0], ((0, 0), (1, 1), (1, 1)))                 # (N, H+2, W+2)
    ph = xpad.reshape(n, hp, 2, wp, 2)
    ph = jnp.transpose(ph, (2, 4, 0, 1, 3)).reshape(4, n, hp, wp)     # (4, N, hp, wp)

    w9 = conv_w[0, 0].reshape(9)                                      # 3x3 -> flat SMEM
    # TODO(synk): ConvTranspose2d is declared (3->1) but receives the 1-channel
    # conv output; only in-channel 0 of its (3,1,3,3) weight is usable.
    # TODO(synk): original `v12 + v11` mixes (N,1,2h-1,2w-1) with (N,1,h,w) and
    # cannot broadcast; we add over the stride-2-aligned subsample of v12
    # (same repair as the previously accepted version).
    s3 = jnp.stack([conv_b[0], convt_w[0, 0, 1, 1], convt_b[0]])      # (3,) SMEM scalars

    out = pl.pallas_call(
        _fused_fwd_kernel,
        out_shape=jax.ShapeDtypeStruct((n, ho, wo), jnp.float32),
        grid=(n,),
        in_specs=[
            pl.BlockSpec((4, 1, hp, wp), lambda i: (0, i, 0, 0)),     # VMEM tile
            pl.BlockSpec(memory_space=pltpu.MemorySpace.SMEM),        # (9,) weights
            pl.BlockSpec(memory_space=pltpu.MemorySpace.SMEM),        # (3,) scalars
        ],
        out_specs=pl.BlockSpec((1, ho, wo), lambda i: (i, 0, 0)),
        compiler_params=pltpu.CompilerParams(
            dimension_semantics=("parallel",)),   # batch across TCs on v7x
    )(ph, w9, s3)

    return out[:, None]                                               # (N,1,ho,wo) NCHW


# ----------------------------------------------------------------------------
# Pure-JAX reference (same repaired semantics) for validation
# ----------------------------------------------------------------------------
def reference_forward(x, conv_w, conv_b, convt_w, convt_b):
    dn = ('NCHW', 'OIHW', 'NCHW')
    v1 = lax.conv_general_dilated(x, conv_w, (2, 2), ((1, 1), (1, 1)),
                                  dimension_numbers=dn) + conv_b[None, :, None, None]
    wt = jnp.transpose(convt_w[0:1, 0:1], (1, 0, 2, 3))[:, :, ::-1, ::-1]  # IOHW->OIHW, flip
    v2 = lax.conv_general_dilated(v1, wt, (1, 1), ((1, 1), (1, 1)),
                                  lhs_dilation=(2, 2),
                                  dimension_numbers=dn) + convt_b[None, :, None, None]
    g = lambda v: (v * 0.5) * (jsp_erf(v * _INV_SQRT2) + 1.0)
    return g(v2)[:, :, ::2, ::2] + g(v1)


if __name__ == "__main__":
    key = jax.random.PRNGKey(0)
    k1, k2, k3, k4, k5 = jax.random.split(key, 5)

    # Small shapes consistent with the module's 1-channel conv path.
    x = jax.random.normal(k1, (2, 1, 16, 16), dtype=jnp.float32)
    conv_w = jax.random.normal(k2, (1, 1, 3, 3), dtype=jnp.float32) * 0.3   # Conv2d(1,1,3)
    conv_b = jax.random.normal(k3, (1,), dtype=jnp.float32) * 0.1
    convt_w = jax.random.normal(k4, (3, 1, 3, 3), dtype=jnp.float32) * 0.3  # ConvTranspose2d(3,1,3)
    convt_b = jax.random.normal(k5, (1,), dtype=jnp.float32) * 0.1

    out = jax.block_until_ready(model_forward(x, conv_w, conv_b, convt_w, convt_b))

    ref = reference_forward(x, conv_w, conv_b, convt_w, convt_b)
    max_err = float(jnp.max(jnp.abs(out - ref)))
    assert out.shape == (2, 1, 8, 8), out.shape
    assert max_err < 1e-4, f"mismatch vs JAX reference: {max_err}"

    print("KERNEL_OK")
</pallas_src>

<mosaic_0001>
module attributes {stable_mosaic.version = 11 : i64} {
  func.func @_fused_fwd_kernel(%arg0: i32, %arg1: memref<4x1x9x9xf32, #tpu.memory_space<vmem>>, %arg2: memref<9xf32, #tpu.memory_space<smem>>, %arg3: memref<3xf32, #tpu.memory_space<smem>>, %arg4: memref<1x8x8xf32, #tpu.memory_space<vmem>>) attributes {dimension_semantics = [#tpu.dimension_semantics<parallel>], iteration_bounds = array<i64: 2>, scalar_prefetch = 0 : i64, scratch_operands = 0 : i64, tpu.core_type = #tpu.core_type<tc>, window_params = [{transform_indices = @transform_0, window_bounds = array<i64: 4, 1, 9, 9>}, {transform_indices = @transform_1, window_bounds = array<i64: 9>}, {transform_indices = @transform_2, window_bounds = array<i64: 3>}, {transform_indices = @transform_3, window_bounds = array<i64: 1, 8, 8>}]} {
    %c0 = arith.constant 0 : index
    %c0_0 = arith.constant 0 : index
    %c0_1 = arith.constant 0 : index
    %c0_2 = arith.constant 0 : index
    %0 = vector.load %arg1[%c0, %c0_0, %c0_1, %c0_2] : memref<4x1x9x9xf32, #tpu.memory_space<vmem>>, vector<1x1x9x9xf32>
    %1 = vector.shape_cast %0 : vector<1x1x9x9xf32> to vector<1x9x9xf32>
    %c1 = arith.constant 1 : index
    %c0_3 = arith.constant 0 : index
    %c0_4 = arith.constant 0 : index
    %c0_5 = arith.constant 0 : index
    %2 = vector.load %arg1[%c1, %c0_3, %c0_4, %c0_5] : memref<4x1x9x9xf32, #tpu.memory_space<vmem>>, vector<1x1x9x9xf32>
    %3 = vector.shape_cast %2 : vector<1x1x9x9xf32> to vector<1x9x9xf32>
    %c2 = arith.constant 2 : index
    %c0_6 = arith.constant 0 : index
    %c0_7 = arith.constant 0 : index
    %c0_8 = arith.constant 0 : index
    %4 = vector.load %arg1[%c2, %c0_6, %c0_7, %c0_8] : memref<4x1x9x9xf32, #tpu.memory_space<vmem>>, vector<1x1x9x9xf32>
    %5 = vector.shape_cast %4 : vector<1x1x9x9xf32> to vector<1x9x9xf32>
    %c3 = arith.constant 3 : index
    %c0_9 = arith.constant 0 : index
    %c0_10 = arith.constant 0 : index
    %c0_11 = arith.constant 0 : index
    %6 = vector.load %arg1[%c3, %c0_9, %c0_10, %c0_11] : memref<4x1x9x9xf32, #tpu.memory_space<vmem>>, vector<1x1x9x9xf32>
    %7 = vector.shape_cast %6 : vector<1x1x9x9xf32> to vector<1x9x9xf32>
    %c0_12 = arith.constant 0 : index
    %8 = memref.load %arg3[%c0_12] : memref<3xf32, #tpu.memory_space<smem>>
    %9 = vector.broadcast %8 : f32 to vector<1x8x8xf32>
    %10 = vector.extract_strided_slice %1 {offsets = [0, 0, 0], sizes = [1, 8, 8], strides = [1, 1, 1]} : vector<1x9x9xf32> to vector<1x8x8xf32>
    %c0_13 = arith.constant 0 : index
    %11 = memref.load %arg2[%c0_13] : memref<9xf32, #tpu.memory_space<smem>>
    %12 = vector.broadcast %11 : f32 to vector<1x8x8xf32>
    %13 = arith.mulf %10, %12 : vector<1x8x8xf32>
    %14 = arith.addf %9, %13 : vector<1x8x8xf32>
    %15 = vector.extract_strided_slice %3 {offsets = [0, 0, 0], sizes = [1, 8, 8], strides = [1, 1, 1]} : vector<1x9x9xf32> to vector<1x8x8xf32>
    %c1_14 = arith.constant 1 : index
    %16 = memref.load %arg2[%c1_14] : memref<9xf32, #tpu.memory_space<smem>>
    %17 = vector.broadcast %16 : f32 to vector<1x8x8xf32>
    %18 = arith.mulf %15, %17 : vector<1x8x8xf32>
    %19 = arith.addf %14, %18 : vector<1x8x8xf32>
    %20 = vector.extract_strided_slice %1 {offsets = [0, 0, 1], sizes = [1, 8, 8], strides = [1, 1, 1]} : vector<1x9x9xf32> to vector<1x8x8xf32>
    %c2_15 = arith.constant 2 : index
    %21 = memref.load %arg2[%c2_15] : memref<9xf32, #tpu.memory_space<smem>>
    %22 = vector.broadcast %21 : f32 to vector<1x8x8xf32>
    %23 = arith.mulf %20, %22 : vector<1x8x8xf32>
    %24 = arith.addf %19, %23 : vector<1x8x8xf32>
    %25 = vector.extract_strided_slice %5 {offsets = [0, 0, 0], sizes = [1, 8, 8], strides = [1, 1, 1]} : vector<1x9x9xf32> to vector<1x8x8xf32>
    %c3_16 = arith.constant 3 : index
    %26 = memref.load %arg2[%c3_16] : memref<9xf32, #tpu.memory_space<smem>>
    %27 = vector.broadcast %26 : f32 to vector<1x8x8xf32>
    %28 = arith.mulf %25, %27 : vector<1x8x8xf32>
    %29 = arith.addf %24, %28 : vector<1x8x8xf32>
    %30 = vector.extract_strided_slice %7 {offsets = [0, 0, 0], sizes = [1, 8, 8], strides = [1, 1, 1]} : vector<1x9x9xf32> to vector<1x8x8xf32>
    %c4 = arith.constant 4 : index
    %31 = memref.load %arg2[%c4] : memref<9xf32, #tpu.memory_space<smem>>
    %32 = vector.broadcast %31 : f32 to vector<1x8x8xf32>
    %33 = arith.mulf %30, %32 : vector<1x8x8xf32>
    %34 = arith.addf %29, %33 : vector<1x8x8xf32>
    %35 = vector.extract_strided_slice %5 {offsets = [0, 0, 1], sizes = [1, 8, 8], strides = [1, 1, 1]} : vector<1x9x9xf32> to vector<1x8x8xf32>
    %c5 = arith.constant 5 : index
    %36 = memref.load %arg2[%c5] : memref<9xf32, #tpu.memory_space<smem>>
    %37 = vector.broadcast %36 : f32 to vector<1x8x8xf32>
    %38 = arith.mulf %35, %37 : vector<1x8x8xf32>
    %39 = arith.addf %34, %38 : vector<1x8x8xf32>
    %40 = vector.extract_strided_slice %1 {offsets = [0, 1, 0], sizes = [1, 8, 8], strides = [1, 1, 1]} : vector<1x9x9xf32> to vector<1x8x8xf32>
    %c6 = arith.constant 6 : index
    %41 = memref.load %arg2[%c6] : memref<9xf32, #tpu.memory_space<smem>>
    %42 = vector.broadcast %41 : f32 to vector<1x8x8xf32>
    %43 = arith.mulf %40, %42 : vector<1x8x8xf32>
    %44 = arith.addf %39, %43 : vector<1x8x8xf32>
    %45 = vector.extract_strided_slice %3 {offsets = [0, 1, 0], sizes = [1, 8, 8], strides = [1, 1, 1]} : vector<1x9x9xf32> to vector<1x8x8xf32>
    %c7 = arith.constant 7 : index
    %46 = memref.load %arg2[%c7] : memref<9xf32, #tpu.memory_space<smem>>
    %47 = vector.broadcast %46 : f32 to vector<1x8x8xf32>
    %48 = arith.mulf %45, %47 : vector<1x8x8xf32>
    %49 = arith.addf %44, %48 : vector<1x8x8xf32>
    %50 = vector.extract_strided_slice %1 {offsets = [0, 1, 1], sizes = [1, 8, 8], strides = [1, 1, 1]} : vector<1x9x9xf32> to vector<1x8x8xf32>
    %c8 = arith.constant 8 : index
    %51 = memref.load %arg2[%c8] : memref<9xf32, #tpu.memory_space<smem>>
    %52 = vector.broadcast %51 : f32 to vector<1x8x8xf32>
    %53 = arith.mulf %50, %52 : vector<1x8x8xf32>
    %54 = arith.addf %49, %53 : vector<1x8x8xf32>
    %c1_17 = arith.constant 1 : index
    %55 = memref.load %arg3[%c1_17] : memref<3xf32, #tpu.memory_space<smem>>
    %56 = vector.broadcast %55 : f32 to vector<1x8x8xf32>
    %57 = arith.mulf %54, %56 : vector<1x8x8xf32>
    %c2_18 = arith.constant 2 : index
    %58 = memref.load %arg3[%c2_18] : memref<3xf32, #tpu.memory_space<smem>>
    %59 = vector.broadcast %58 : f32 to vector<1x8x8xf32>
    %60 = arith.addf %57, %59 : vector<1x8x8xf32>
    %cst = arith.constant 5.000000e-01 : f32
    %61 = vector.broadcast %cst : f32 to vector<1x8x8xf32>
    %62 = arith.mulf %60, %61 : vector<1x8x8xf32>
    %cst_19 = arith.constant 0.707106769 : f32
    %63 = vector.broadcast %cst_19 : f32 to vector<1x8x8xf32>
    %64 = arith.mulf %60, %63 : vector<1x8x8xf32>
    %cst_20 = arith.constant 0.000000e+00 : f32
    %65 = vector.broadcast %cst_20 : f32 to vector<1x8x8xf32>
    %66 = arith.cmpf oge, %64, %65 : vector<1x8x8xf32>
    %cst_21 = arith.constant 1.000000e+00 : f32
    %cst_22 = arith.constant -1.000000e+00 : f32
    %67 = vector.broadcast %cst_21 : f32 to vector<1x8x8xf32>
    %68 = vector.broadcast %cst_22 : f32 to vector<1x8x8xf32>
    %69 = arith.select %66, %67, %68 : vector<1x8x8xi1>, vector<1x8x8xf32>
    %70 = math.absf %64 : vector<1x8x8xf32>
    %cst_23 = arith.constant 0.327591091 : f32
    %71 = vector.broadcast %cst_23 : f32 to vector<1x8x8xf32>
    %72 = arith.mulf %71, %70 : vector<1x8x8xf32>
    %cst_24 = arith.constant 1.000000e+00 : f32
    %73 = vector.broadcast %cst_24 : f32 to vector<1x8x8xf32>
    %74 = arith.addf %73, %72 : vector<1x8x8xf32>
    %cst_25 = arith.constant 1.000000e+00 : f32
    %75 = vector.broadcast %cst_25 : f32 to vector<1x8x8xf32>
    %76 = arith.divf %75, %74 : vector<1x8x8xf32>
    %cst_26 = arith.constant 1.06140542 : f32
    %77 = vector.broadcast %cst_26 : f32 to vector<1x8x8xf32>
    %78 = arith.mulf %77, %76 : vector<1x8x8xf32>
    %cst_27 = arith.constant -1.45315206 : f32
    %79 = vector.broadcast %cst_27 : f32 to vector<1x8x8xf32>
    %80 = arith.addf %78, %79 : vector<1x8x8xf32>
    %81 = arith.mulf %80, %76 : vector<1x8x8xf32>
    %cst_28 = arith.constant 1.42141378 : f32
    %82 = vector.broadcast %cst_28 : f32 to vector<1x8x8xf32>
    %83 = arith.addf %81, %82 : vector<1x8x8xf32>
    %84 = arith.mulf %83, %76 : vector<1x8x8xf32>
    %cst_29 = arith.constant -0.284496725 : f32
    %85 = vector.broadcast %cst_29 : f32 to vector<1x8x8xf32>
    %86 = arith.addf %84, %85 : vector<1x8x8xf32>
    %87 = arith.mulf %86, %76 : vector<1x8x8xf32>
    %cst_30 = arith.constant 0.254829586 : f32
    %88 = vector.broadcast %cst_30 : f32 to vector<1x8x8xf32>
    %89 = arith.addf %87, %88 : vector<1x8x8xf32>
    %90 = arith.mulf %89, %76 : vector<1x8x8xf32>
    %cst_31 = arith.constant 0.000000e+00 : f32
    %91 = vector.broadcast %cst_31 : f32 to vector<1x8x8xf32>
    %92 = arith.subf %91, %70 : vector<1x8x8xf32>
    %93 = arith.mulf %92, %70 : vector<1x8x8xf32>
    %94 = math.exp %93 : vector<1x8x8xf32>
    %95 = arith.mulf %90, %94 : vector<1x8x8xf32>
    %cst_32 = arith.constant 1.000000e+00 : f32
    %96 = vector.broadcast %cst_32 : f32 to vector<1x8x8xf32>
    %97 = arith.subf %96, %95 : vector<1x8x8xf32>
    %98 = arith.mulf %69, %97 : vector<1x8x8xf32>
    %cst_33 = arith.constant 1.000000e+00 : f32
    %99 = vector.broadcast %cst_33 : f32 to vector<1x8x8xf32>
    %100 = arith.addf %98, %99 : vector<1x8x8xf32>
    %101 = arith.mulf %62, %100 : vector<1x8x8xf32>
    %cst_34 = arith.constant 5.000000e-01 : f32
    %102 = vector.broadcast %cst_34 : f32 to vector<1x8x8xf32>
    %103 = arith.mulf %54, %102 : vector<1x8x8xf32>
    %cst_35 = arith.constant 0.707106769 : f32
    %104 = vector.broadcast %cst_35 : f32 to vector<1x8x8xf32>
    %105 = arith.mulf %54, %104 : vector<1x8x8xf32>
    %cst_36 = arith.constant 0.000000e+00 : f32
    %106 = vector.broadcast %cst_36 : f32 to vector<1x8x8xf32>
    %107 = arith.cmpf oge, %105, %106 : vector<1x8x8xf32>
    %cst_37 = arith.constant 1.000000e+00 : f32
    %cst_38 = arith.constant -1.000000e+00 : f32
    %108 = vector.broadcast %cst_37 : f32 to vector<1x8x8xf32>
    %109 = vector.broadcast %cst_38 : f32 to vector<1x8x8xf32>
    %110 = arith.select %107, %108, %109 : vector<1x8x8xi1>, vector<1x8x8xf32>
    %111 = math.absf %105 : vector<1x8x8xf32>
    %cst_39 = arith.constant 0.327591091 : f32
    %112 = vector.broadcast %cst_39 : f32 to vector<1x8x8xf32>
    %113 = arith.mulf %112, %111 : vector<1x8x8xf32>
    %cst_40 = arith.constant 1.000000e+00 : f32
    %114 = vector.broadcast %cst_40 : f32 to vector<1x8x8xf32>
    %115 = arith.addf %114, %113 : vector<1x8x8xf32>
    %cst_41 = arith.constant 1.000000e+00 : f32
    %116 = vector.broadcast %cst_41 : f32 to vector<1x8x8xf32>
    %117 = arith.divf %116, %115 : vector<1x8x8xf32>
    %cst_42 = arith.constant 1.06140542 : f32
    %118 = vector.broadcast %cst_42 : f32 to vector<1x8x8xf32>
    %119 = arith.mulf %118, %117 : vector<1x8x8xf32>
    %cst_43 = arith.constant -1.45315206 : f32
    %120 = vector.broadcast %cst_43 : f32 to vector<1x8x8xf32>
    %121 = arith.addf %119, %120 : vector<1x8x8xf32>
    %122 = arith.mulf %121, %117 : vector<1x8x8xf32>
    %cst_44 = arith.constant 1.42141378 : f32
    %123 = vector.broadcast %cst_44 : f32 to vector<1x8x8xf32>
    %124 = arith.addf %122, %123 : vector<1x8x8xf32>
    %125 = arith.mulf %124, %117 : vector<1x8x8xf32>
    %cst_45 = arith.constant -0.284496725 : f32
    %126 = vector.broadcast %cst_45 : f32 to vector<1x8x8xf32>
    %127 = arith.addf %125, %126 : vector<1x8x8xf32>
    %128 = arith.mulf %127, %117 : vector<1x8x8xf32>
    %cst_46 = arith.constant 0.254829586 : f32
    %129 = vector.broadcast %cst_46 : f32 to vector<1x8x8xf32>
    %130 = arith.addf %128, %129 : vector<1x8x8xf32>
    %131 = arith.mulf %130, %117 : vector<1x8x8xf32>
    %cst_47 = arith.constant 0.000000e+00 : f32
    %132 = vector.broadcast %cst_47 : f32 to vector<1x8x8xf32>
    %133 = arith.subf %132, %111 : vector<1x8x8xf32>
    %134 = arith.mulf %133, %111 : vector<1x8x8xf32>
    %135 = math.exp %134 : vector<1x8x8xf32>
    %136 = arith.mulf %131, %135 : vector<1x8x8xf32>
    %cst_48 = arith.constant 1.000000e+00 : f32
    %137 = vector.broadcast %cst_48 : f32 to vector<1x8x8xf32>
    %138 = arith.subf %137, %136 : vector<1x8x8xf32>
    %139 = arith.mulf %110, %138 : vector<1x8x8xf32>
    %cst_49 = arith.constant 1.000000e+00 : f32
    %140 = vector.broadcast %cst_49 : f32 to vector<1x8x8xf32>
    %141 = arith.addf %139, %140 : vector<1x8x8xf32>
    %142 = arith.mulf %103, %141 : vector<1x8x8xf32>
    %143 = arith.addf %101, %142 : vector<1x8x8xf32>
    %c0_50 = arith.constant 0 : index
    %c0_51 = arith.constant 0 : index
    %c0_52 = arith.constant 0 : index
    %144 = vector.load %arg4[%c0_50, %c0_51, %c0_52] : memref<1x8x8xf32, #tpu.memory_space<vmem>>, vector<1x8x8xf32>
    tpu.vector_store %arg4[%c0_50, %c0_51, %c0_52], %143 {strides = array<i32>} : memref<1x8x8xf32, #tpu.memory_space<vmem>>, vector<1x8x8xf32>,
    return
  }
  func.func @transform_0(%arg0: i32) -> (i32, i32, i32, i32) {
    %c0_i32 = arith.constant 0 : i32
    %c0_i32_0 = arith.constant 0 : i32
    %c0_i32_1 = arith.constant 0 : i32
    %c0_i32_2 = arith.constant 0 : i32
    return %c0_i32, %arg0, %c0_i32_0, %c0_i32_1 : i32, i32, i32, i32
  }
  func.func @transform_1(%arg0: i32) -> i32 {
    %c0_i32 = arith.constant 0 : i32
    %c0_i32_0 = arith.constant 0 : i32
    return %c0_i32 : i32
  }
  func.func @transform_2(%arg0: i32) -> i32 {
    %c0_i32 = arith.constant 0 : i32
    %c0_i32_0 = arith.constant 0 : i32
    return %c0_i32 : i32
  }
  func.func @transform_3(%arg0: i32) -> (i32, i32, i32) {
    %c0_i32 = arith.constant 0 : i32
    %c0_i32_0 = arith.constant 0 : i32
    %c0_i32_1 = arith.constant 0 : i32
    return %arg0, %c0_i32, %c0_i32_0 : i32, i32, i32
  }
}

</mosaic_0001>

<bundles_post_ra>
// kernel: squeeze.4
= control target key start
LH: loop header
LB: loop body
LE: loop exit
PB: predicated region body
PF: predicated region fallthrough
CT: control target
= control target key end

     0   :  { %s30_s8 = smov 3   ;;  %vm7_vm0 = vcmask 23552   ;;  %vm13_vm1 = vcmask 72752   ;;  %vm19_vm2 = vcmask 48152   ;;  %s47_s0 = inlined_call_operand.vmem [shape: f32[3,3], index: 0, kind: input, shape index: {}]   ;;  %s48_s1 = inlined_call_operand.vmem [shape: f32[9], index: 1, kind: output, shape index: {}]  }
   0x1   :  { %v4_v0 = vld [vmem:[%s47_s0] sm:$0xf]  ;;  %s29_s0 = smov 6  }
   0x2   :  { %5 = vst [vmem:[#allocation1] sm:$0xf] %v4_v0 }
   0x9   :  { %v10_v1 = vld [vmem:[#allocation1 + $0x2] sm:$0x1]   ;;  %v16_v2 = vld [vmem:[#allocation1 + $0x1] sm:$0x1]   ;;  %v6_v3 = vld [vmem:[#allocation1] sm:$0x1]  }
   0xa   :  { %11 = vrot.lane.b32.xlu0 %v10_v1, %s29_s0  ;;  %8 = vst.msk [vmem:[#allocation0] sm:$0x1] %vm7_vm0, %v6_v3  }
  0x12   :  { %17 = vrot.lane.b32.xlu0 %v16_v2, %s30_s8 }
  0x7c   :  { %v12_v4 = vpop.permute.xlu0 %11  }
  0x7d   :  { %14 = vst.msk [vmem:[#allocation0] sm:$0x1] %vm13_vm1, %v12_v4  }
  0x84   :  { %v18_v5 = vpop.permute.xlu0 %17  }
  0x85   :  { %20 = vst.msk [vmem:[#allocation0] sm:$0x1] %vm19_vm2, %v18_v5  }
  0x8c   :  { %v23_v6 = vld [vmem:[#allocation0] sm:$0x1] }
  0x8d   :  { %26 = vst [vmem:[%s48_s1] sm:$0x1] %v23_v6 }

// kernel: model_forward.1
= control target key start
LH: loop header
LB: loop body
LE: loop exit
PB: predicated region body
PF: predicated region fallthrough
CT: control target
= control target key end

     0   :  { %8 = vsyncpa [#allocation5], 0  ;;  %s913_s0 = inlined_call_operand.vmem [shape: f32[4,2,9,9], index: 0, kind: input, shape index: {}]   ;;  %s914_s1 = inlined_call_operand.vmem [shape: f32[9], index: 1, kind: input, shape index: {}]   ;;  %s915_s2 = inlined_call_operand.vmem [shape: f32[3], index: 2, kind: input, shape index: {}]   ;;  %s916_s3 = inlined_call_operand.hbm [shape: f32[2,8,8], index: 3, kind: output, shape index: {}]  }
   0x1   :  { %9 = vsyncpa [#allocation7], 0 }
   0x2   :  { %10 = vsyncpa [#allocation4], 0 }
   0x3   :  { %12 = vsyncpa [#allocation4 + $0x1], 0  ;;  %s759_s12 = smov 0   ;;  %s761_s13 = smov 0  }
   0x4   :  { %s763_s14 = smov 0   ;;  %s765_s15 = smov 0  }
   0x5 LB: > { %s780_s16 = sadd.s32 4294967295, %s733_s15   ;;  %s531_s17 = sadd.s32 4294967294, %s733_s15   ;;  %s733_s15 = sphi %s765_s15, %s924_s15   ;;  %s729_s14 = sphi %s763_s14, %s923_s14   ;;  %s725_s13 = sphi %s761_s13, %s922_s13   ;;  %s721_s12 = sphi %s759_s12, %s921_s12  }
   0x6   : > { %s784_s18 = sadd.s32 1, %s733_s15   ;;  %s25_s19 = sadd.s32 1, %s729_s14 }
   0x7   : > { %s22_s20 = ssub.s32 %s733_s15, %s784_s18  ;;  %p32_p0 = scmp.ne.s32.totalorder %s729_s14, %s725_s13 }
   0x8   : > { %p23_p1 = scmp.eq.s32.totalorder %s22_s20, 0  ;;  %p33_p2 = scmp.eq.s32.totalorder %s733_s15, 0 }
   0x9   : > { %p104_p3 = scmp.eq.s32.totalorder %s780_s16, 1  ;;  %p109_p4 = scmp.ne.s32.totalorder %s725_s13, %s721_s12 }
   0xa   : > { %s796_s21 = scalar_select %p23_p1, %s729_s14, %s25_s19  }
   0xb   : > { %p798_p5 = por %p33_p2, %p32_p0  ;;  %p802_p6 = por %p104_p3, %p32_p0 }
   0xc   : > { %p110_p7 = scmp.eq.s32.totalorder %s531_s17, 1  ;;  %p532_p8 = scmp.ge.s32.totalorder %s733_s15, 1 }
   0xd   : > { %p117_p9 = scmp.lt.s32.totalorder %s733_s15, 3  ;;  %p584_p11 = scmp.eq.s32.totalorder %s780_s16, 0 }
   0xe   : > { %p808_p10 = por %p110_p7, %p109_p4  ;;  %s129_s28 = sshll.u32 %s914_s1, 4  ;;  %s130_s28 = int_to_ptr.vmem [resolvable:$true] %s129_s28 }
   0xf   : > { %p813_p12 = pnand %p532_p8, %p117_p9  ;;  %s139_s4 = sshll.u32 %s915_s2, 4  ;;  %s140_s4 = int_to_ptr.vmem [resolvable:$true] %s139_s4 }
  0x10   : > { %s735_s5 = smov [#allocation3]   ;;  %s736_s6 = smov [#allocation6]  }
  0x11   : > { %p573_p13 = pneg %p813_p12  ;;  %p535_p1 = scmp.ge.s32.totalorder %s733_s15, 2 }
  0x13   : > { %p574_p0 = pnand %p584_p11, %p573_p13  ;;  %146 = sbr.rel (%p535_p1) target bundleno = 36 (0x24), region = 24 }
  0x15   : > { %576 = dma.vmem_to_smem (!%p574_p0), %s130_s28, 16, %s735_s5, [#allocation5]  }
  0x16   : > { %579 = dma.vmem_to_smem (!%p574_p0), %s140_s4, 16, %s736_s6, [#allocation7]  }
  0x18   : > { %149 = sbr.rel (!%p798_p5) target bundleno = 36 (0x24), region = 28  ;;  %s151_s7 = sand.u32 (%p798_p5), 1, %s729_s14  }
  0x19   : > { %s562_s8 = sshll.u32 (%p798_p5), %s733_s15, 4  ;;  %s536_s9 = sshll.u32 (%p798_p5), %s151_s7, 6 }
  0x1a   : > { %s156_s17 = scalar_lea.vmem (%p798_p5), %s913_s0, %s562_s8  ;;  %s153_s19 = scalar_lea.vmem (%p798_p5), [#allocation2], %s536_s9 }
  0x1b   : > { %v199_v0 = vld [vmem:[%s156_s17] sm:$0xff] (%p798_p5)  ;;  %v201_v1 = vld [vmem:[%s156_s17 + $0x8] sm:$0xff] (%p798_p5) }
  0x1c   : > { %v203_v2 = vld [vmem:[%s156_s17 + $0x20] sm:$0xff] (%p798_p5)  ;;  %200 = vst [vmem:[%s153_s19] sm:$0xff] (%p798_p5), %v199_v0  ;;  %v205_v3 = vld [vmem:[%s156_s17 + $0x28] sm:$0xff] (%p798_p5) }
  0x1d   : > { %202 = vst [vmem:[%s153_s19 + $0x8] sm:$0xff] %v201_v1  ;;  %v207_v4 = vld [vmem:[%s156_s17 + $0x40] sm:$0xff]  ;;  %v209_v5 = vld [vmem:[%s156_s17 + $0x48] sm:$0xff] }
  0x1e   : > { %204 = vst [vmem:[%s153_s19 + $0x10] sm:$0xff] %v203_v2  ;;  %v211_v6 = vld [vmem:[%s156_s17 + $0x60] sm:$0xff]  ;;  %v213_v7 = vld [vmem:[%s156_s17 + $0x68] sm:$0xff] }
  0x1f   : > { %206 = vst [vmem:[%s153_s19 + $0x18] sm:$0xff] %v205_v3 }
  0x20   : > { %208 = vst [vmem:[%s153_s19 + $0x20] sm:$0xff] %v207_v4 }
  0x21   : > { %210 = vst [vmem:[%s153_s19 + $0x28] sm:$0xff] %v209_v5 }
  0x22   : > { %212 = vst [vmem:[%s153_s19 + $0x30] sm:$0xff] %v211_v6 }
  0x23   : > { %214 = vst [vmem:[%s153_s19 + $0x38] sm:$0xff] %v213_v7 }
  0x24 PF: > { %223 = sbr.rel (%p813_p12) target bundleno = 248 (0xf8), region = 66  ;;  %s840_s20 = sand.u32 (!%p813_p12), 1, %s725_s13  }
  0x25   : > { %s540_s22 = sshll.u32 (!%p813_p12), %s840_s20, 6 }
  0x26   : > { %s843_s26 = scalar_lea.vmem (!%p813_p12), [#allocation2], %s540_s22 }
  0x29   : > { %708 = dma.done.wait (%p584_p11), [#allocation5], 16  }
  0x2a   : > { %710 = vsyncadd (%p584_p11), [#allocation5], 4294967280 }
  0x2b   : > { %712 = dma.done.wait (%p584_p11), [#allocation7], 16  }
  0x2c   : > { %714 = vsyncadd (%p584_p11), [#allocation7], 4294967280 }
  0x2d   : > { %242 = sfence }
  0x2e   : > { %s549_s25 = sld [smem:[#allocation3 + $0x2]]  ;;  %v260_v8 = vld [vmem:[%s843_s26] sm:$0xff]  ;;  %v261_v11 = vld [vmem:[%s843_s26 + $0x8] sm:$0x1]  ;;  %s737_s29 = smov 127   ;;  %vm309_vm0 = vcmask 1046528  }
  0x2f   : > { %s552_s27 = sld [smem:[#allocation3 + $0x5]]  ;;  %v546_v13 = vld [vmem:[%s843_s26 + $0x20] sm:$0xff]  ;;  %v544_v23 = vld [vmem:[%s843_s26 + $0x10] sm:$0xff]  ;;  %v545_v33 = vld [vmem:[%s843_s26 + $0x18] sm:$0x1]  ;;  %s543_s17 = sshll.u32 %s840_s20, 3 }
  0x30   : > { %s555_s28 = sld [smem:[#allocation3 + $0x8]]  ;;  %v547_v36 = vld [vmem:[%s843_s26 + $0x30] sm:$0xff]  ;;  %s559_s19 = sshll.u32 %s780_s16, 3  ;;  %vm426_vm11 = vcmask 64512  }
  0x31   : > { %s271_s30 = sld [smem:[#allocation3]]  ;;  %s429_s16 = scalar_lea.sflag [#allocation4], %s840_s20 }
  0x32   : > { %s269_s4 = sld [smem:[#allocation6]] }
  0x33   : > { %s548_s5 = sld [smem:[#allocation3 + $0x1]] }
  0x34   : > { %v280_v9 = vstv %s549_s25  ;;  %s550_s6 = sld [smem:[#allocation3 + $0x3]]  ;;  %s439_s25 = scalar_lea.hbm %s916_s3, %s559_s19 }
  0x35   : > { %v281_v10 = vmul.f32 %v280_v9, %v260_v8  ;;  %v296_v14 = vstv %s552_s27  ;;  %s553_s7 = sld [smem:[#allocation3 + $0x6]]  ;;  %s259_s27 = scalar_lea.vmem [#allocation8], %s543_s17 }
  0x36   : > { %v327_v12 = vstv %s555_s28  ;;  %v297_v19 = vmul.f32 %v546_v13, %v296_v14  ;;  %s554_s8 = sld [smem:[#allocation3 + $0x7]]  ;;  %s441_s28 = sshll.u32 %s259_s27, 4  ;;  %s442_s28 = int_to_ptr.vmem [resolvable:$true] %s441_s28 }
  0x37   : > { %283 = vrot.lane.b32.xlu0 %v281_v10, %s737_s29  ;;  %v328_v15 = vmul.f32 %v327_v12, %v260_v8  ;;  %v329_v16 = vmul.f32 %v327_v12, %v261_v11  ;;  %v272_v21 = vstv %s271_s30  ;;  %s551_s9 = sld [smem:[#allocation3 + $0x4]] }
  0x38   : > { %v273_v22 = vmul.f32 %v272_v21, %v260_v8  ;;  %v270_v24 = vstv %s269_s4  ;;  %s556_s10 = sld [smem:[#allocation6 + $0x1]] }
  0x39   : > { %v332_v17 = vrot.slane %v328_v15, 1  ;;  %v333_v18 = vrot.slane %v329_v16, 1  ;;  %v276_v25 = vstv %s548_s5  ;;  %s557_s11 = sld [smem:[#allocation6 + $0x2]] }
  0x3a   : > { %v277_v26 = vmul.f32 %v544_v23, %v276_v25  ;;  %v274_v27 = vadd.f32 %v273_v22, %v270_v24  ;;  %v288_v28 = vstv %s550_s6 }
  0x3b   : > { %v334_v20 = vsel %vm309_vm0, %v332_v17, %v333_v18  ;;  %v304_v29 = vstv %s553_s7  ;;  %v289_v31 = vmul.f32 %v546_v13, %v288_v28  ;;  %s683_s7 = scalar_lea.hbm %s916_s3, 16 }
  0x3c   : > { %335 = vrot.lane.b32.xlu1 %v334_v20, %s737_s29  ;;  %v278_v30 = vadd.f32 %v277_v26, %v274_v27  ;;  %v316_v32 = vstv %s554_s8  ;;  %v306_v34 = vmul.f32 %v304_v29, %v261_v11  ;;  %v305_v38 = vmul.f32 %v304_v29, %v260_v8 }
  0x3d   : > { %v292_v37 = vstv %s551_s9  ;;  %v317_v40 = vmul.f32 %v544_v23, %v316_v32  ;;  %v318_v41 = vmul.f32 %v545_v33, %v316_v32 }
  0x3e   : > { %v293_v43 = vmul.f32 %v547_v36, %v292_v37  ;;  %v310_v44 = vrot.slane %v305_v38, 1  ;;  %v311_v45 = vrot.slane %v306_v34, 1  ;;  %v340_v56 = vstv %s556_s10 }
  0x3f   : > { %299 = vrot.lane.b32.xlu0 %v297_v19, %s737_s29  ;;  %v321_v46 = vrot.slane %v317_v40, 1  ;;  %v322_v47 = vrot.slane %v318_v41, 1  ;;  %v343_v58 = vstv %s557_s11  ;;  %s443_s29 = sshll.u32 %s439_s25, 4  ;;  %s444_s29 = int_to_ptr.hbm [resolvable:$true] %s443_s29 }
  0x40   : > { %v312_v49 = vsel %vm309_vm0, %v310_v44, %v311_v45  ;;  %s677_s30 = sshra.s32 %s444_s29, 4  ;;  %s678_s30 = int_to_ptr.hbm [resolvable:$true] %s677_s30 }
  0x41   : > { %v323_v52 = vsel %vm309_vm0, %v321_v46, %v322_v47  ;;  %s679_s4 = scalar_lea.hbm %s678_s30, 8  ;;  %p684_p5 = scmp.lt.s32.totalorder %s678_s30, %s916_s3 }
  0x42   : > { %p680_p2 = scmp.ne.s32.totalorder %s678_s30, %s679_s4  ;;  %p685_p7 = scmp.lt.s32.totalorder %s683_s7, %s679_s4 }
  0x44   : > { %p681_p3 = pnand %p680_p2, %p802_p6  ;;  %p686_p8 = por %p685_p7, %p684_p5 }
  0x46   : > { %p682_p4 = pneg %p681_p3 }
  0x48   : > { %p687_p9 = pnand %p686_p8, %p682_p4 }
  0xa9   : > { %v284_v35 = vpop.permute.xlu0 %283 }
  0xaa   : > { %v286_v39 = vadd.f32 %v284_v35, %v278_v30 }
  0xac   : > { %v290_v42 = vadd.f32 %v289_v31, %v286_v39 }
  0xae   : > { %v294_v48 = vadd.f32 %v293_v43, %v290_v42  ;;  %v336_v54 = vpop.permute.xlu1 %335 }
  0xb1   : > { %v300_v50 = vpop.permute.xlu0 %299 }
  0xb2   : > { %v302_v51 = vadd.f32 %v300_v50, %v294_v48 }
  0xb4   : > { %v314_v53 = vadd.f32 %v312_v49, %v302_v51 }
  0xb6   : > { %v325_v55 = vadd.f32 %v323_v52, %v314_v53  ;;  %v738_v53 = vmov -1.0  }
  0xb8   : > { %v862_v57 = vadd.f32 %v336_v54, %v325_v55 }
  0xba   : > { %v341_v59 = vmul.f32 %v340_v56, %v862_v57  ;;  %v866_v60 = vmul.f32 0.70710677, %v862_v57 }
  0xbc   : > { %v868_v61 = vadd.f32 %v343_v58, %v341_v59  ;;  %v389_v62 = vand.u32 2147483647, %v866_v60  ;;  %vm387_vm9 = vcmp.ge.f32.partialorder %v866_v60, 0.0 }
  0xbd   : > { %v388_v54 = vsel %vm387_vm9, 1.0, %v738_v53 }
  0xbe   : > { %v872_v63 = vmul.f32 0.70710677, %v868_v61  ;;  %v390_v0 = vmul.f32 0.3275911, %v389_v62  ;;  %v416_v21 = vsub.f32 0.0, %v389_v62  ;;  %v345_v60 = vmul.f32 0.5, %v868_v61 }
  0xc0   : > { %v349_v1 = vand.u32 2147483647, %v872_v63  ;;  %v391_v2 = vadd.f32 1.0, %v390_v0  ;;  %v417_v29 = vmul.f32 %v416_v21, %v389_v62  ;;  %vm347_vm10 = vcmp.ge.f32.partialorder %v872_v63, 0.0 }
  0xc1   : > { %v348_v59 = vsel %vm347_vm10, 1.0, %v738_v53 }
  0xc2   : > { %v350_v3 = vmul.f32 0.3275911, %v349_v1  ;;  %625 = vrcp.f32 %v391_v2  ;;  %v401_v9 = vand.u32 2147483647, %v391_v2  ;;  %v403_v10 = vand.u32 2147483648, %v391_v2 }
  0xc3   : > { %vm397_vm2 = vweird.f32 %v391_v2  ;;  %v376_v28 = vsub.f32 0.0, %v349_v1  ;;  %v418_v35 = vmul.f32 1.442695, %v417_v29 }
  0xc4   : > { %v351_v4 = vadd.f32 1.0, %v350_v3  ;;  %vm402_vm4 = vcmp.eq.f32.partialorder %v401_v9, 8.507059e+37  ;;  %v404_v16 = vor.u32 1.1754944e-38, %v403_v10 }
  0xc5   : > { %v377_v34 = vmul.f32 %v376_v28, %v349_v1 }
  0xc6   : > { %627 = vrcp.f32 %v351_v4  ;;  %v363_v15 = vand.u32 2147483648, %v351_v4  ;;  %v361_v18 = vand.u32 2147483647, %v351_v4  ;;  %vm357_vm6 = vweird.f32 %v351_v4 }
  0xc7   : > { %v378_v40 = vmul.f32 1.442695, %v377_v34  ;;  %629 = vpow2.f32 %v418_v35 }
  0xc8   : > { %v626_v5 = vpop.eup %625  ;;  %v364_v24 = vor.u32 1.1754944e-38, %v363_v15  ;;  %vm362_vm8 = vcmp.eq.f32.partialorder %v361_v18, 8.507059e+37 }
  0xc9   : > { %v393_v6 = vmul.f32 %v626_v5, %v391_v2  ;;  %vm398_vm1 = vweird.f32 %v626_v5  ;;  %631 = vpow2.f32 %v378_v40  ;;  %v385_v2 = vmul.f32 0.5, %v862_v57 }
  0xca   : > { %vm399_vm3 = vmor %vm397_vm2, %vm398_vm1 }
  0xcb   : > { %v394_v7 = vsub.f32 1.0, %v393_v6 }
  0xcc   : > { %v628_v8 = vpop.eup %627 }
  0xcd   : > { %v353_v11 = vmul.f32 %v628_v8, %v351_v4  ;;  %v395_v12 = vmul.f32 %v626_v5, %v394_v7  ;;  %vm358_vm5 = vweird.f32 %v628_v8  ;;  %v630_v47 = vpop.eup %629 }
  0xce   : > { %vm359_vm7 = vmor %vm357_vm6, %vm358_vm5 }
  0xcf   : > { %v354_v13 = vsub.f32 1.0, %v353_v11  ;;  %v396_v14 = vadd.f32 %v626_v5, %v395_v12  ;;  %v632_v52 = vpop.eup %631 }
  0xd1   : > { %v355_v17 = vmul.f32 %v628_v8, %v354_v13  ;;  %v400_v19 = vsel %vm399_vm3, %v626_v5, %v396_v14 }
  0xd2   : > { %v405_v20 = vsel %vm402_vm4, %v404_v16, %v400_v19 }
  0xd3   : > { %v356_v22 = vadd.f32 %v628_v8, %v355_v17  ;;  %v407_v23 = vmul.f32 1.0614054, %v405_v20 }
  0xd5   : > { %v360_v25 = vsel %vm359_vm7, %v628_v8, %v356_v22  ;;  %v408_v26 = vadd.f32 -1.4531521, %v407_v23 }
  0xd6   : > { %v365_v27 = vsel %vm362_vm8, %v364_v24, %v360_v25 }
  0xd7   : > { %v367_v30 = vmul.f32 1.0614054, %v365_v27  ;;  %v409_v31 = vmul.f32 %v408_v26, %v405_v20 }
  0xd9   : > { %v368_v32 = vadd.f32 -1.4531521, %v367_v30  ;;  %v410_v33 = vadd.f32 1.4214138, %v409_v31 }
  0xdb   : > { %v369_v36 = vmul.f32 %v368_v32, %v365_v27  ;;  %v411_v37 = vmul.f32 %v410_v33, %v405_v20 }
  0xdd   : > { %v370_v38 = vadd.f32 1.4214138, %v369_v36  ;;  %v412_v39 = vadd.f32 -0.28449672, %v411_v37 }
  0xdf   : > { %v371_v41 = vmul.f32 %v370_v38, %v365_v27  ;;  %v413_v42 = vmul.f32 %v412_v39, %v405_v20 }
  0xe1   : > { %v372_v43 = vadd.f32 -0.28449672, %v371_v41  ;;  %v414_v44 = vadd.f32 0.2548296, %v413_v42 }
  0xe3   : > { %v373_v45 = vmul.f32 %v372_v43, %v365_v27  ;;  %v415_v46 = vmul.f32 %v414_v44, %v405_v20 }
  0xe5   : > { %v374_v48 = vadd.f32 0.2548296, %v373_v45  ;;  %v420_v49 = vmul.f32 %v630_v47, %v415_v46 }
  0xe7   : > { %v375_v50 = vmul.f32 %v374_v48, %v365_v27  ;;  %v421_v51 = vsub.f32 1.0, %v420_v49 }
  0xe9   : > { %v380_v55 = vmul.f32 %v632_v52, %v375_v50  ;;  %v422_v56 = vmul.f32 %v421_v51, %v388_v54 }
  0xeb   : > { %v381_v58 = vsub.f32 1.0, %v380_v55  ;;  %v423_v0 = vadd.f32 1.0, %v422_v56 }
  0xed   : > { %v382_v62 = vmul.f32 %v381_v58, %v348_v59  ;;  %v424_v63 = vmul.f32 %v423_v0, %v385_v2 }
  0xef   : > { %v383_v1 = vadd.f32 1.0, %v382_v62 }
  0xf1   : > { %v384_v3 = vmul.f32 %v383_v1, %v345_v60 }
  0xf3   : > { %v425_v4 = vadd.f32 %v424_v63, %v384_v3 }
  0xf5   : > { %427 = vst.msk [vmem:[%s259_s27] sm:$0xff] %vm426_vm11, %v425_v4 }
  0xf6   : > { %690 = shalt.err (!%p687_p9)
}
  0xf7   : > { %571 = dma.vmem_to_hbm [thread:$0]  (%p802_p6), %s442_s28, 128, %s444_s29, %s429_s16  }
  0xf8 PF: > { %s455_s20 = sand.u32 1, %s721_s12   ;;  %p581_p11 = pnand %p535_p1, %p808_p10 }
  0xf9   : > { %s456_s10 = scalar_lea.sflag [#allocation4], %s455_s20 }
  0xfa   : > { %p582_p12 = pneg %p581_p11 }
  0xfc   : > { %716 = dma.done.wait (%p582_p12), %s456_s10, 128  }
  0xfd   : > { %718 = vsyncadd (%p582_p12), %s456_s10, 4294967168  ;;  %p15_p13 = scmp.ge.s32.totalorder %s784_s18, 4   ;;  %s921_s12 = smov %s725_s13 }
  0xfe   : > { %s922_s13 = smov %s729_s14  ;;  %s923_s14 = smov %s796_s21 }
  0xff   : > { %s924_s15 = smov %s784_s18  ;;  %17 = sbr.rel (!%p15_p13) target bundleno = 5 (0x5), region = 122 }
 0x104   :  { %462 = vsyncpa [#allocation4], 1 }
 0x105   :  { %464 = vsyncpa [#allocation4 + $0x1], 1 }
 0x106   :  { %465 = vsyncpa [#allocation5], 1 }
 0x107   :  { %467 = vsyncpa [#allocation5 + $0x1], 1 }
 0x108   :  { %468 = vsyncpa [#allocation7], 1 }

</bundles_post_ra>
